<compile_context>
chip_gen: v7x
topology: tpu7x:2x2x1
jax: 0.10.0
libtpu: 0.0.40
codegen_flags: <defaults>
</compile_context>

<pallas_src>
import math

import jax
import jax.numpy as jnp
from jax import lax
from jax.experimental import pallas as pl
from jax.experimental.pallas import tpu as pltpu


def _round_up(n, m):
    return ((n + m - 1) // m) * m


def _largest_divisor_at_most(n, cap):
    cap = max(1, min(n, cap))
    for d in range(cap, 0, -1):
        if n % d == 0:
            return d
    return 1


# ---------------------------------------------------------------------------
# Pallas kernel: only the serial LSTM recurrence (x-projection precomputed).
# ---------------------------------------------------------------------------
def _lstm_recurrence_kernel(pre_ref, whh_ref, out_ref, h_ref, c_ref, h_sc, c_sc):
    # pre_ref : (tT, bB, 4*Hp)  precomputed x @ W_ih^T + bias, gate order [i,f,o,g]
    # whh_ref : (Hp, 4*Hp)      hidden->gates weight (transposed, repacked)
    # out_ref : (tT, bB, Hp)    per-step hidden states for this time chunk
    # h_ref/c_ref : (bB, Hp)    final hidden / cell (written on last time chunk)
    # h_sc/c_sc   : (bB, Hp)    VMEM scratch carrying state across time chunks
    t_chunk = pl.program_id(1)
    n_t_chunks = pl.num_programs(1)
    tT = pre_ref.shape[0]
    Hp = h_sc.shape[-1]

    @pl.when(t_chunk == 0)
    def _init():
        h_sc[...] = jnp.zeros_like(h_sc)
        c_sc[...] = jnp.zeros_like(c_sc)

    # Hoist the recurrent weight load out of the time loop (loaded once/chunk).
    whh = whh_ref[...]

    def step(t, carry):
        gates = pre_ref[t] + jnp.dot(
            h_sc[...], whh, preferred_element_type=jnp.float32)  # (bB, 4Hp)
        sig = jax.nn.sigmoid(gates[:, :3 * Hp])   # [i | f | o] one contiguous slab
        g_g = jnp.tanh(gates[:, 3 * Hp:])         # [g]
        i_g = sig[:, :Hp]
        f_g = sig[:, Hp:2 * Hp]
        o_g = sig[:, 2 * Hp:]

        c_new = f_g * c_sc[...] + i_g * g_g
        h_new = o_g * jnp.tanh(c_new)

        c_sc[...] = c_new
        h_sc[...] = h_new
        out_ref[t] = h_new.astype(out_ref.dtype)
        return carry

    lax.fori_loop(0, tT, step, 0, unroll=(True if tT <= 8 else 4))

    @pl.when(t_chunk == n_t_chunks - 1)
    def _finalize():
        h_ref[...] = h_sc[...].astype(h_ref.dtype)
        c_ref[...] = c_sc[...].astype(c_ref.dtype)


# ---------------------------------------------------------------------------
# Parameter repacking: PyTorch [i, f, g, o] -> lane-dense [i, f, o, g], pad H.
# ---------------------------------------------------------------------------
def _pack_gates_weight(w, H, Hp):
    # w: (4H, in_dim) PyTorch layout. Return (in_dim, 4*Hp), columns [i,f,o,g],
    # each gate zero-padded from H to Hp lanes.
    w_i, w_f, w_g, w_o = w[0:H], w[H:2 * H], w[2 * H:3 * H], w[3 * H:4 * H]

    def pad_t(wg):
        return jnp.pad(wg.T, ((0, 0), (0, Hp - H)))

    return jnp.concatenate([pad_t(w_i), pad_t(w_f), pad_t(w_o), pad_t(w_g)], axis=1)


def _pack_gates_bias(b, H, Hp):
    b_i, b_f, b_g, b_o = b[0:H], b[H:2 * H], b[2 * H:3 * H], b[3 * H:4 * H]
    pad = lambda v: jnp.pad(v, (0, Hp - H))
    return jnp.concatenate([pad(b_i), pad(b_f), pad(b_o), pad(b_g)])


# ---------------------------------------------------------------------------
# Wrapper.
# ---------------------------------------------------------------------------
def encoder_rnn_forward(x, params, *, time_chunk=None):
    """x: (B, T, input_size) float32 -> (output, hidden, cell)."""
    # Match the PyTorch forward's unsqueeze behaviour for low-rank inputs.
    if x.ndim == 1:
        x = x[:, None, None]
    elif x.ndim == 2:
        x = x[:, :, None]

    B, T, _ = x.shape
    H = params["w_hh"].shape[1]                  # w_hh: (4H, H)
    Hp = _round_up(H, 128)                       # lane-dense gate width
    Bp = _round_up(B, 8)                         # sublane-dense batch

    wih_p = _pack_gates_weight(params["w_ih"], H, Hp)                 # (I, 4Hp)
    whh_p = jnp.pad(_pack_gates_weight(params["w_hh"], H, Hp),
                    ((0, Hp - H), (0, 0)))                            # (Hp, 4Hp)
    bias_p = _pack_gates_bias(params["b_ih"] + params["b_hh"], H, Hp)  # (4Hp,)

    # Hoisted input projection: one big MXU matmul over all T*B rows, emitted
    # time-major so the kernel's serial loop indexes the leading axis.
    # TODO(synk): optionally cast matmul operands to bf16 for realistic H.
    x_p = jnp.pad(x.astype(jnp.float32), ((0, Bp - B), (0, 0), (0, 0)))  # (Bp,T,I)
    pre = jnp.einsum("bti,ig->tbg", x_p, wih_p,
                     preferred_element_type=jnp.float32) + bias_p        # (T,Bp,4Hp)

    # Time-chunked grid: VMEM bounded to weights + double-buffered chunks.
    itemsize = 4
    per_step_bytes = Bp * (4 * Hp + Hp) * itemsize
    budget = 8 << 20                              # conservative (fits v7x VMEM)
    if time_chunk is None:
        time_chunk = max(1, budget // (2 * per_step_bytes))
    tT = _largest_divisor_at_most(T, min(time_chunk, 256))
    nt = T // tT

    bB = Bp                                       # one batch chunk (set < Bp to
    nb = Bp // bB                                 # split batch across v7x cores)
    grid = (nb, nt)

    block_bytes = tT * bB * (4 * Hp + Hp) * itemsize
    whh_bytes = Hp * 4 * Hp * itemsize
    scratch_bytes = 2 * bB * Hp * itemsize
    vmem_limit = int(min(
        48 << 20,
        max(16 << 20, 2 * block_bytes + 2 * whh_bytes + scratch_bytes + (2 << 20))))

    out_tm, h_n, c_n = pl.pallas_call(
        _lstm_recurrence_kernel,
        out_shape=(
            jax.ShapeDtypeStruct((T, Bp, Hp), jnp.float32),
            jax.ShapeDtypeStruct((Bp, Hp), jnp.float32),
            jax.ShapeDtypeStruct((Bp, Hp), jnp.float32),
        ),
        grid=grid,
        in_specs=[
            pl.BlockSpec((tT, bB, 4 * Hp), lambda b, t: (t, b, 0)),   # pre chunk
            pl.BlockSpec((Hp, 4 * Hp), lambda b, t: (0, 0)),          # whh
        ],
        out_specs=(
            pl.BlockSpec((tT, bB, Hp), lambda b, t: (t, b, 0)),       # output chunk
            pl.BlockSpec((bB, Hp), lambda b, t: (b, 0)),              # final h
            pl.BlockSpec((bB, Hp), lambda b, t: (b, 0)),              # final c
        ),
        scratch_shapes=[
            pltpu.VMEM((bB, Hp), jnp.float32),    # h carry
            pltpu.VMEM((bB, Hp), jnp.float32),    # c carry
        ],
        compiler_params=pltpu.CompilerParams(
            dimension_semantics=("parallel", "arbitrary"),
            vmem_limit_bytes=vmem_limit,
        ),
    )(pre, whh_p)

    output = jnp.transpose(out_tm[:, :B, :H], (1, 0, 2))   # (B, T, H)
    hidden = h_n[:B, :H][None]                              # (1, B, H)
    cell = c_n[:B, :H][None]                                # (1, B, H)
    return output, hidden, cell


# ---------------------------------------------------------------------------
# Deterministic parameter init (nn.LSTM shapes; uniform(-1/sqrt(H), 1/sqrt(H))).
# ---------------------------------------------------------------------------
def init_params(key, input_size, hidden_size):
    k = 1.0 / math.sqrt(hidden_size)
    ks = jax.random.split(key, 4)
    return {
        "w_ih": jax.random.uniform(ks[0], (4 * hidden_size, input_size),
                                   jnp.float32, -k, k),
        "w_hh": jax.random.uniform(ks[1], (4 * hidden_size, hidden_size),
                                   jnp.float32, -k, k),
        "b_ih": jax.random.uniform(ks[2], (4 * hidden_size,),
                                   jnp.float32, -k, k),
        "b_hh": jax.random.uniform(ks[3], (4 * hidden_size,),
                                   jnp.float32, -k, k),
    }


# ---------------------------------------------------------------------------
# Pure-JAX reference (lax.scan LSTM) for the correctness check.
# ---------------------------------------------------------------------------
def reference_lstm(x, params):
    B, T, _ = x.shape
    H = params["w_hh"].shape[1]
    wih_t = params["w_ih"].T
    whh_t = params["w_hh"].T
    bias = params["b_ih"] + params["b_hh"]

    def step(carry, x_t):
        h, c = carry
        gates = x_t @ wih_t + h @ whh_t + bias
        i_g = jax.nn.sigmoid(gates[:, 0 * H:1 * H])
        f_g = jax.nn.sigmoid(gates[:, 1 * H:2 * H])
        g_g = jnp.tanh(gates[:, 2 * H:3 * H])
        o_g = jax.nn.sigmoid(gates[:, 3 * H:4 * H])
        c_new = f_g * c + i_g * g_g
        h_new = o_g * jnp.tanh(c_new)
        return (h_new, c_new), h_new

    h0 = jnp.zeros((B, H), jnp.float32)
    c0 = jnp.zeros((B, H), jnp.float32)
    (h_n, c_n), out_tm = lax.scan(step, (h0, c0), jnp.transpose(x, (1, 0, 2)))
    return jnp.transpose(out_tm, (1, 0, 2)), h_n[None], c_n[None]


if __name__ == "__main__":
    # Small shapes consistent with the module: batch=2, seq=8, feat=4, hidden=32.
    B, T, INPUT_SIZE, HIDDEN = 2, 8, 4, 32

    key = jax.random.PRNGKey(0)
    k_param, k_x = jax.random.split(key)
    params = init_params(k_param, INPUT_SIZE, HIDDEN)
    x = jax.random.normal(k_x, (B, T, INPUT_SIZE), jnp.float32)

    # time_chunk=4 -> grid=(1, 2): exercises the chunked, state-carrying path.
    output, hidden, cell = encoder_rnn_forward(x, params, time_chunk=4)
    jax.block_until_ready((output, hidden, cell))

    # sanity-check against the pure-JAX LSTM reference
    ref_out, ref_h, ref_c = reference_lstm(x, params)
    assert output.shape == (B, T, HIDDEN)
    assert hidden.shape == (1, B, HIDDEN)
    assert cell.shape == (1, B, HIDDEN)
    assert jnp.allclose(output, ref_out, atol=1e-5, rtol=1e-5)
    assert jnp.allclose(hidden, ref_h, atol=1e-5, rtol=1e-5)
    assert jnp.allclose(cell, ref_c, atol=1e-5, rtol=1e-5)

    # TODO(synk): normalization=True branch (BatchNorm1d + LayerNorm) not
    # exercised by default constructor args; omitted here.
    print("KERNEL_OK")
</pallas_src>

<mosaic_0001>
module attributes {stable_mosaic.version = 11 : i64} {
  func.func @_lstm_recurrence_kernel(%arg0: i32, %arg1: i32, %arg2: memref<4x8x512xf32, #tpu.memory_space<vmem>>, %arg3: memref<128x512xf32, #tpu.memory_space<vmem>>, %arg4: memref<4x8x128xf32, #tpu.memory_space<vmem>>, %arg5: memref<8x128xf32, #tpu.memory_space<vmem>>, %arg6: memref<8x128xf32, #tpu.memory_space<vmem>>, %arg7: memref<8x128xf32, #tpu.memory_space<vmem>>, %arg8: memref<8x128xf32, #tpu.memory_space<vmem>>) attributes {dimension_semantics = [#tpu.dimension_semantics<parallel>, #tpu.dimension_semantics<arbitrary>], iteration_bounds = array<i64: 1, 2>, scalar_prefetch = 0 : i64, scratch_operands = 2 : i64, tpu.core_type = #tpu.core_type<tc>, window_params = [{transform_indices = @transform_0, window_bounds = array<i64: 4, 8, 512>}, {pipeline_mode = #tpu.pipeline_mode<synchronous>, transform_indices = @transform_1, window_bounds = array<i64: 128, 512>}, {transform_indices = @transform_2, window_bounds = array<i64: 4, 8, 128>}, {transform_indices = @transform_3, window_bounds = array<i64: 8, 128>}, {transform_indices = @transform_4, window_bounds = array<i64: 8, 128>}]} {
    %c0_i32 = arith.constant 0 : i32
    %0 = arith.cmpi eq, %arg1, %c0_i32 : i32
    %1 = arith.extui %0 : i1 to i32
    %c0_i32_0 = arith.constant 0 : i32
    %2 = arith.cmpi ne, %1, %c0_i32_0 : i32
    scf.if %2 {
      %cst_60 = arith.constant 0.000000e+00 : f32
      %123 = vector.broadcast %cst_60 : f32 to vector<8x128xf32>
      %c0_61 = arith.constant 0 : index
      %c0_62 = arith.constant 0 : index
      %124 = vector.load %arg7[%c0_61, %c0_62] : memref<8x128xf32, #tpu.memory_space<vmem>>, vector<8x128xf32>
      tpu.vector_store %arg7[%c0_61, %c0_62], %123 {strides = array<i32>} : memref<8x128xf32, #tpu.memory_space<vmem>>, vector<8x128xf32>,
      %cst_63 = arith.constant 0.000000e+00 : f32
      %125 = vector.broadcast %cst_63 : f32 to vector<8x128xf32>
      %c0_64 = arith.constant 0 : index
      %c0_65 = arith.constant 0 : index
      %126 = vector.load %arg8[%c0_64, %c0_65] : memref<8x128xf32, #tpu.memory_space<vmem>>, vector<8x128xf32>
      tpu.vector_store %arg8[%c0_64, %c0_65], %125 {strides = array<i32>} : memref<8x128xf32, #tpu.memory_space<vmem>>, vector<8x128xf32>,
    } else {
    }
    %c0 = arith.constant 0 : index
    %c0_1 = arith.constant 0 : index
    %3 = vector.load %arg3[%c0, %c0_1] : memref<128x512xf32, #tpu.memory_space<vmem>>, vector<128x512xf32>
    %c0_i32_2 = arith.constant 0 : i32
    %4 = arith.index_cast %c0_i32_2 : i32 to index
    %c0_3 = arith.constant 0 : index
    %c0_4 = arith.constant 0 : index
    %5 = vector.load %arg2[%4, %c0_3, %c0_4] : memref<4x8x512xf32, #tpu.memory_space<vmem>>, vector<1x8x512xf32>
    %6 = vector.shape_cast %5 : vector<1x8x512xf32> to vector<8x512xf32>
    %c0_5 = arith.constant 0 : index
    %c0_6 = arith.constant 0 : index
    %7 = vector.load %arg7[%c0_5, %c0_6] : memref<8x128xf32, #tpu.memory_space<vmem>>, vector<8x128xf32>
    %cst = arith.constant dense<0.000000e+00> : vector<8x512xf32>
    %8 = tpu.matmul %7, %3, %cst {dimension_numbers = #tpu.dot_dimension_numbers<[1], [0], [0], [1], [0, 0, 1, 1], [], []>} : vector<8x128xf32>, vector<128x512xf32>, vector<8x512xf32> -> vector<8x512xf32>
    %9 = arith.addf %6, %8 : vector<8x512xf32>
    %10 = vector.extract_strided_slice %9 {offsets = [0, 0], sizes = [8, 384], strides = [1, 1]} : vector<8x512xf32> to vector<8x384xf32>
    %11 = arith.negf %10 : vector<8x384xf32>
    %12 = math.exp %11 : vector<8x384xf32>
    %cst_7 = arith.constant 1.000000e+00 : f32
    %13 = vector.broadcast %cst_7 : f32 to vector<8x384xf32>
    %14 = arith.addf %13, %12 : vector<8x384xf32>
    %15 = arith.divf %13, %14 : vector<8x384xf32>
    %16 = vector.extract_strided_slice %9 {offsets = [0, 384], sizes = [8, 128], strides = [1, 1]} : vector<8x512xf32> to vector<8x128xf32>
    %17 = math.tanh %16 : vector<8x128xf32>
    %18 = vector.extract_strided_slice %15 {offsets = [0, 0], sizes = [8, 128], strides = [1, 1]} : vector<8x384xf32> to vector<8x128xf32>
    %19 = vector.extract_strided_slice %15 {offsets = [0, 128], sizes = [8, 128], strides = [1, 1]} : vector<8x384xf32> to vector<8x128xf32>
    %20 = vector.extract_strided_slice %15 {offsets = [0, 256], sizes = [8, 128], strides = [1, 1]} : vector<8x384xf32> to vector<8x128xf32>
    %c0_8 = arith.constant 0 : index
    %c0_9 = arith.constant 0 : index
    %21 = vector.load %arg8[%c0_8, %c0_9] : memref<8x128xf32, #tpu.memory_space<vmem>>, vector<8x128xf32>
    %22 = arith.mulf %19, %21 : vector<8x128xf32>
    %23 = arith.mulf %18, %17 : vector<8x128xf32>
    %24 = arith.addf %22, %23 : vector<8x128xf32>
    %25 = math.tanh %24 : vector<8x128xf32>
    %26 = arith.mulf %20, %25 : vector<8x128xf32>
    %c0_10 = arith.constant 0 : index
    %c0_11 = arith.constant 0 : index
    %27 = vector.load %arg8[%c0_10, %c0_11] : memref<8x128xf32, #tpu.memory_space<vmem>>, vector<8x128xf32>
    tpu.vector_store %arg8[%c0_10, %c0_11], %24 {strides = array<i32>} : memref<8x128xf32, #tpu.memory_space<vmem>>, vector<8x128xf32>,
    %c0_12 = arith.constant 0 : index
    %c0_13 = arith.constant 0 : index
    %28 = vector.load %arg7[%c0_12, %c0_13] : memref<8x128xf32, #tpu.memory_space<vmem>>, vector<8x128xf32>
    tpu.vector_store %arg7[%c0_12, %c0_13], %26 {strides = array<i32>} : memref<8x128xf32, #tpu.memory_space<vmem>>, vector<8x128xf32>,
    %29 = arith.index_cast %c0_i32_2 : i32 to index
    %c0_14 = arith.constant 0 : index
    %c0_15 = arith.constant 0 : index
    %30 = vector.load %arg4[%29, %c0_14, %c0_15] : memref<4x8x128xf32, #tpu.memory_space<vmem>>, vector<1x8x128xf32>
    %31 = vector.shape_cast %30 : vector<1x8x128xf32> to vector<8x128xf32>
    %32 = vector.shape_cast %26 : vector<8x128xf32> to vector<1x8x128xf32>
    tpu.vector_store %arg4[%29, %c0_14, %c0_15], %32 {strides = array<i32>} : memref<4x8x128xf32, #tpu.memory_space<vmem>>, vector<1x8x128xf32>,
    %c1_i32 = arith.constant 1 : i32
    %33 = arith.index_cast %c1_i32 : i32 to index
    %c0_16 = arith.constant 0 : index
    %c0_17 = arith.constant 0 : index
    %34 = vector.load %arg2[%33, %c0_16, %c0_17] : memref<4x8x512xf32, #tpu.memory_space<vmem>>, vector<1x8x512xf32>
    %35 = vector.shape_cast %34 : vector<1x8x512xf32> to vector<8x512xf32>
    %c0_18 = arith.constant 0 : index
    %c0_19 = arith.constant 0 : index
    %36 = vector.load %arg7[%c0_18, %c0_19] : memref<8x128xf32, #tpu.memory_space<vmem>>, vector<8x128xf32>
    %cst_20 = arith.constant dense<0.000000e+00> : vector<8x512xf32>
    %37 = tpu.matmul %36, %3, %cst_20 {dimension_numbers = #tpu.dot_dimension_numbers<[1], [0], [0], [1], [0, 0, 1, 1], [], []>} : vector<8x128xf32>, vector<128x512xf32>, vector<8x512xf32> -> vector<8x512xf32>
    %38 = arith.addf %35, %37 : vector<8x512xf32>
    %39 = vector.extract_strided_slice %38 {offsets = [0, 0], sizes = [8, 384], strides = [1, 1]} : vector<8x512xf32> to vector<8x384xf32>
    %40 = arith.negf %39 : vector<8x384xf32>
    %41 = math.exp %40 : vector<8x384xf32>
    %cst_21 = arith.constant 1.000000e+00 : f32
    %42 = vector.broadcast %cst_21 : f32 to vector<8x384xf32>
    %43 = arith.addf %42, %41 : vector<8x384xf32>
    %44 = arith.divf %42, %43 : vector<8x384xf32>
    %45 = vector.extract_strided_slice %38 {offsets = [0, 384], sizes = [8, 128], strides = [1, 1]} : vector<8x512xf32> to vector<8x128xf32>
    %46 = math.tanh %45 : vector<8x128xf32>
    %47 = vector.extract_strided_slice %44 {offsets = [0, 0], sizes = [8, 128], strides = [1, 1]} : vector<8x384xf32> to vector<8x128xf32>
    %48 = vector.extract_strided_slice %44 {offsets = [0, 128], sizes = [8, 128], strides = [1, 1]} : vector<8x384xf32> to vector<8x128xf32>
    %49 = vector.extract_strided_slice %44 {offsets = [0, 256], sizes = [8, 128], strides = [1, 1]} : vector<8x384xf32> to vector<8x128xf32>
    %c0_22 = arith.constant 0 : index
    %c0_23 = arith.constant 0 : index
    %50 = vector.load %arg8[%c0_22, %c0_23] : memref<8x128xf32, #tpu.memory_space<vmem>>, vector<8x128xf32>
    %51 = arith.mulf %48, %50 : vector<8x128xf32>
    %52 = arith.mulf %47, %46 : vector<8x128xf32>
    %53 = arith.addf %51, %52 : vector<8x128xf32>
    %54 = math.tanh %53 : vector<8x128xf32>
    %55 = arith.mulf %49, %54 : vector<8x128xf32>
    %c0_24 = arith.constant 0 : index
    %c0_25 = arith.constant 0 : index
    %56 = vector.load %arg8[%c0_24, %c0_25] : memref<8x128xf32, #tpu.memory_space<vmem>>, vector<8x128xf32>
    tpu.vector_store %arg8[%c0_24, %c0_25], %53 {strides = array<i32>} : memref<8x128xf32, #tpu.memory_space<vmem>>, vector<8x128xf32>,
    %c0_26 = arith.constant 0 : index
    %c0_27 = arith.constant 0 : index
    %57 = vector.load %arg7[%c0_26, %c0_27] : memref<8x128xf32, #tpu.memory_space<vmem>>, vector<8x128xf32>
    tpu.vector_store %arg7[%c0_26, %c0_27], %55 {strides = array<i32>} : memref<8x128xf32, #tpu.memory_space<vmem>>, vector<8x128xf32>,
    %58 = arith.index_cast %c1_i32 : i32 to index
    %c0_28 = arith.constant 0 : index
    %c0_29 = arith.constant 0 : index
    %59 = vector.load %arg4[%58, %c0_28, %c0_29] : memref<4x8x128xf32, #tpu.memory_space<vmem>>, vector<1x8x128xf32>
    %60 = vector.shape_cast %59 : vector<1x8x128xf32> to vector<8x128xf32>
    %61 = vector.shape_cast %55 : vector<8x128xf32> to vector<1x8x128xf32>
    tpu.vector_store %arg4[%58, %c0_28, %c0_29], %61 {strides = array<i32>} : memref<4x8x128xf32, #tpu.memory_space<vmem>>, vector<1x8x128xf32>,
    %c2_i32 = arith.constant 2 : i32
    %62 = arith.index_cast %c2_i32 : i32 to index
    %c0_30 = arith.constant 0 : index
    %c0_31 = arith.constant 0 : index
    %63 = vector.load %arg2[%62, %c0_30, %c0_31] : memref<4x8x512xf32, #tpu.memory_space<vmem>>, vector<1x8x512xf32>
    %64 = vector.shape_cast %63 : vector<1x8x512xf32> to vector<8x512xf32>
    %c0_32 = arith.constant 0 : index
    %c0_33 = arith.constant 0 : index
    %65 = vector.load %arg7[%c0_32, %c0_33] : memref<8x128xf32, #tpu.memory_space<vmem>>, vector<8x128xf32>
    %cst_34 = arith.constant dense<0.000000e+00> : vector<8x512xf32>
    %66 = tpu.matmul %65, %3, %cst_34 {dimension_numbers = #tpu.dot_dimension_numbers<[1], [0], [0], [1], [0, 0, 1, 1], [], []>} : vector<8x128xf32>, vector<128x512xf32>, vector<8x512xf32> -> vector<8x512xf32>
    %67 = arith.addf %64, %66 : vector<8x512xf32>
    %68 = vector.extract_strided_slice %67 {offsets = [0, 0], sizes = [8, 384], strides = [1, 1]} : vector<8x512xf32> to vector<8x384xf32>
    %69 = arith.negf %68 : vector<8x384xf32>
    %70 = math.exp %69 : vector<8x384xf32>
    %cst_35 = arith.constant 1.000000e+00 : f32
    %71 = vector.broadcast %cst_35 : f32 to vector<8x384xf32>
    %72 = arith.addf %71, %70 : vector<8x384xf32>
    %73 = arith.divf %71, %72 : vector<8x384xf32>
    %74 = vector.extract_strided_slice %67 {offsets = [0, 384], sizes = [8, 128], strides = [1, 1]} : vector<8x512xf32> to vector<8x128xf32>
    %75 = math.tanh %74 : vector<8x128xf32>
    %76 = vector.extract_strided_slice %73 {offsets = [0, 0], sizes = [8, 128], strides = [1, 1]} : vector<8x384xf32> to vector<8x128xf32>
    %77 = vector.extract_strided_slice %73 {offsets = [0, 128], sizes = [8, 128], strides = [1, 1]} : vector<8x384xf32> to vector<8x128xf32>
    %78 = vector.extract_strided_slice %73 {offsets = [0, 256], sizes = [8, 128], strides = [1, 1]} : vector<8x384xf32> to vector<8x128xf32>
    %c0_36 = arith.constant 0 : index
    %c0_37 = arith.constant 0 : index
    %79 = vector.load %arg8[%c0_36, %c0_37] : memref<8x128xf32, #tpu.memory_space<vmem>>, vector<8x128xf32>
    %80 = arith.mulf %77, %79 : vector<8x128xf32>
    %81 = arith.mulf %76, %75 : vector<8x128xf32>
    %82 = arith.addf %80, %81 : vector<8x128xf32>
    %83 = math.tanh %82 : vector<8x128xf32>
    %84 = arith.mulf %78, %83 : vector<8x128xf32>
    %c0_38 = arith.constant 0 : index
    %c0_39 = arith.constant 0 : index
    %85 = vector.load %arg8[%c0_38, %c0_39] : memref<8x128xf32, #tpu.memory_space<vmem>>, vector<8x128xf32>
    tpu.vector_store %arg8[%c0_38, %c0_39], %82 {strides = array<i32>} : memref<8x128xf32, #tpu.memory_space<vmem>>, vector<8x128xf32>,
    %c0_40 = arith.constant 0 : index
    %c0_41 = arith.constant 0 : index
    %86 = vector.load %arg7[%c0_40, %c0_41] : memref<8x128xf32, #tpu.memory_space<vmem>>, vector<8x128xf32>
    tpu.vector_store %arg7[%c0_40, %c0_41], %84 {strides = array<i32>} : memref<8x128xf32, #tpu.memory_space<vmem>>, vector<8x128xf32>,
    %87 = arith.index_cast %c2_i32 : i32 to index
    %c0_42 = arith.constant 0 : index
    %c0_43 = arith.constant 0 : index
    %88 = vector.load %arg4[%87, %c0_42, %c0_43] : memref<4x8x128xf32, #tpu.memory_space<vmem>>, vector<1x8x128xf32>
    %89 = vector.shape_cast %88 : vector<1x8x128xf32> to vector<8x128xf32>
    %90 = vector.shape_cast %84 : vector<8x128xf32> to vector<1x8x128xf32>
    tpu.vector_store %arg4[%87, %c0_42, %c0_43], %90 {strides = array<i32>} : memref<4x8x128xf32, #tpu.memory_space<vmem>>, vector<1x8x128xf32>,
    %c3_i32 = arith.constant 3 : i32
    %91 = arith.index_cast %c3_i32 : i32 to index
    %c0_44 = arith.constant 0 : index
    %c0_45 = arith.constant 0 : index
    %92 = vector.load %arg2[%91, %c0_44, %c0_45] : memref<4x8x512xf32, #tpu.memory_space<vmem>>, vector<1x8x512xf32>
    %93 = vector.shape_cast %92 : vector<1x8x512xf32> to vector<8x512xf32>
    %c0_46 = arith.constant 0 : index
    %c0_47 = arith.constant 0 : index
    %94 = vector.load %arg7[%c0_46, %c0_47] : memref<8x128xf32, #tpu.memory_space<vmem>>, vector<8x128xf32>
    %cst_48 = arith.constant dense<0.000000e+00> : vector<8x512xf32>
    %95 = tpu.matmul %94, %3, %cst_48 {dimension_numbers = #tpu.dot_dimension_numbers<[1], [0], [0], [1], [0, 0, 1, 1], [], []>} : vector<8x128xf32>, vector<128x512xf32>, vector<8x512xf32> -> vector<8x512xf32>
    %96 = arith.addf %93, %95 : vector<8x512xf32>
    %97 = vector.extract_strided_slice %96 {offsets = [0, 0], sizes = [8, 384], strides = [1, 1]} : vector<8x512xf32> to vector<8x384xf32>
    %98 = arith.negf %97 : vector<8x384xf32>
    %99 = math.exp %98 : vector<8x384xf32>
    %cst_49 = arith.constant 1.000000e+00 : f32
    %100 = vector.broadcast %cst_49 : f32 to vector<8x384xf32>
    %101 = arith.addf %100, %99 : vector<8x384xf32>
    %102 = arith.divf %100, %101 : vector<8x384xf32>
    %103 = vector.extract_strided_slice %96 {offsets = [0, 384], sizes = [8, 128], strides = [1, 1]} : vector<8x512xf32> to vector<8x128xf32>
    %104 = math.tanh %103 : vector<8x128xf32>
    %105 = vector.extract_strided_slice %102 {offsets = [0, 0], sizes = [8, 128], strides = [1, 1]} : vector<8x384xf32> to vector<8x128xf32>
    %106 = vector.extract_strided_slice %102 {offsets = [0, 128], sizes = [8, 128], strides = [1, 1]} : vector<8x384xf32> to vector<8x128xf32>
    %107 = vector.extract_strided_slice %102 {offsets = [0, 256], sizes = [8, 128], strides = [1, 1]} : vector<8x384xf32> to vector<8x128xf32>
    %c0_50 = arith.constant 0 : index
    %c0_51 = arith.constant 0 : index
    %108 = vector.load %arg8[%c0_50, %c0_51] : memref<8x128xf32, #tpu.memory_space<vmem>>, vector<8x128xf32>
    %109 = arith.mulf %106, %108 : vector<8x128xf32>
    %110 = arith.mulf %105, %104 : vector<8x128xf32>
    %111 = arith.addf %109, %110 : vector<8x128xf32>
    %112 = math.tanh %111 : vector<8x128xf32>
    %113 = arith.mulf %107, %112 : vector<8x128xf32>
    %c0_52 = arith.constant 0 : index
    %c0_53 = arith.constant 0 : index
    %114 = vector.load %arg8[%c0_52, %c0_53] : memref<8x128xf32, #tpu.memory_space<vmem>>, vector<8x128xf32>
    tpu.vector_store %arg8[%c0_52, %c0_53], %111 {strides = array<i32>} : memref<8x128xf32, #tpu.memory_space<vmem>>, vector<8x128xf32>,
    %c0_54 = arith.constant 0 : index
    %c0_55 = arith.constant 0 : index
    %115 = vector.load %arg7[%c0_54, %c0_55] : memref<8x128xf32, #tpu.memory_space<vmem>>, vector<8x128xf32>
    tpu.vector_store %arg7[%c0_54, %c0_55], %113 {strides = array<i32>} : memref<8x128xf32, #tpu.memory_space<vmem>>, vector<8x128xf32>,
    %116 = arith.index_cast %c3_i32 : i32 to index
    %c0_56 = arith.constant 0 : index
    %c0_57 = arith.constant 0 : index
    %117 = vector.load %arg4[%116, %c0_56, %c0_57] : memref<4x8x128xf32, #tpu.memory_space<vmem>>, vector<1x8x128xf32>
    %118 = vector.shape_cast %117 : vector<1x8x128xf32> to vector<8x128xf32>
    %119 = vector.shape_cast %113 : vector<8x128xf32> to vector<1x8x128xf32>
    tpu.vector_store %arg4[%116, %c0_56, %c0_57], %119 {strides = array<i32>} : memref<4x8x128xf32, #tpu.memory_space<vmem>>, vector<1x8x128xf32>,
    %c4_i32 = arith.constant 4 : i32
    %c1_i32_58 = arith.constant 1 : i32
    %120 = arith.cmpi eq, %arg1, %c1_i32_58 : i32
    %121 = arith.extui %120 : i1 to i32
    %c0_i32_59 = arith.constant 0 : i32
    %122 = arith.cmpi ne, %121, %c0_i32_59 : i32
    scf.if %122 {
      %c0_60 = arith.constant 0 : index
      %c0_61 = arith.constant 0 : index
      %123 = vector.load %arg7[%c0_60, %c0_61] : memref<8x128xf32, #tpu.memory_space<vmem>>, vector<8x128xf32>
      %c0_62 = arith.constant 0 : index
      %c0_63 = arith.constant 0 : index
      %124 = vector.load %arg5[%c0_62, %c0_63] : memref<8x128xf32, #tpu.memory_space<vmem>>, vector<8x128xf32>
      tpu.vector_store %arg5[%c0_62, %c0_63], %123 {strides = array<i32>} : memref<8x128xf32, #tpu.memory_space<vmem>>, vector<8x128xf32>,
      %c0_64 = arith.constant 0 : index
      %c0_65 = arith.constant 0 : index
      %125 = vector.load %arg8[%c0_64, %c0_65] : memref<8x128xf32, #tpu.memory_space<vmem>>, vector<8x128xf32>
      %c0_66 = arith.constant 0 : index
      %c0_67 = arith.constant 0 : index
      %126 = vector.load %arg6[%c0_66, %c0_67] : memref<8x128xf32, #tpu.memory_space<vmem>>, vector<8x128xf32>
      tpu.vector_store %arg6[%c0_66, %c0_67], %125 {strides = array<i32>} : memref<8x128xf32, #tpu.memory_space<vmem>>, vector<8x128xf32>,
    } else {
    }
    return
  }
  func.func @transform_0(%arg0: i32, %arg1: i32) -> (i32, i32, i32) {
    %c0_i32 = arith.constant 0 : i32
    %c0_i32_0 = arith.constant 0 : i32
    return %arg1, %arg0, %c0_i32 : i32, i32, i32
  }
  func.func @transform_1(%arg0: i32, %arg1: i32) -> (i32, i32) {
    %c0_i32 = arith.constant 0 : i32
    %c0_i32_0 = arith.constant 0 : i32
    %c0_i32_1 = arith.constant 0 : i32
    return %c0_i32, %c0_i32_0 : i32, i32
  }
  func.func @transform_2(%arg0: i32, %arg1: i32) -> (i32, i32, i32) {
    %c0_i32 = arith.constant 0 : i32
    %c0_i32_0 = arith.constant 0 : i32
    return %arg1, %arg0, %c0_i32 : i32, i32, i32
  }
  func.func @transform_3(%arg0: i32, %arg1: i32) -> (i32, i32) {
    %c0_i32 = arith.constant 0 : i32
    %c0_i32_0 = arith.constant 0 : i32
    return %arg0, %c0_i32 : i32, i32
  }
  func.func @transform_4(%arg0: i32, %arg1: i32) -> (i32, i32) {
    %c0_i32 = arith.constant 0 : i32
    %c0_i32_0 = arith.constant 0 : i32
    return %arg0, %c0_i32 : i32, i32
  }
}

</mosaic_0001>

<bundles_post_ra>
// kernel: tpu_custom_call.1
= control target key start
LH: loop header
LB: loop body
LE: loop exit
PB: predicated region body
PF: predicated region fallthrough
CT: control target
= control target key end

     0   :  { %10 = vsyncpa [#allocation5], 0  ;;  %s2426_s0 = inlined_call_operand.hbm [shape: f32[8,8,512], index: 0, kind: input, shape index: {}]   ;;  %s2427_s1 = inlined_call_operand.hbm [shape: f32[128,512], index: 1, kind: input, shape index: {}]   ;;  %s2428_s2 = inlined_call_operand.hbm [shape: f32[8,8,128], index: 2, kind: output, shape index: {0}]   ;;  %s2429_s3 = inlined_call_operand.hbm [shape: f32[8,128], index: 3, kind: output, shape index: {1}]   ;;  %s2430_s4 = inlined_call_operand.hbm [shape: f32[8,128], index: 4, kind: output, shape index: {2}]  }
   0x1   :  { %12 = vsyncpa [#allocation5 + $0x1], 0 }
   0x2   :  { %13 = vsyncpa [#allocation8], 0 }
   0x3   :  { %14 = vsyncpa [#allocation6], 0 }
   0x4   :  { %16 = vsyncpa [#allocation6 + $0x1], 0 }
   0x5   :  { %17 = vsyncpa [#allocation11], 0  ;;  %s1925_s15 = smov 0   ;;  %s1927_s16 = smov 0  }
   0x6   :  { %s1929_s17 = smov 0   ;;  %s1931_s18 = smov 0  }
   0x7   :  { %s1933_s19 = smov 0   ;;  %s1935_s20 = smov 0  }
   0x8 LB: > { %s1220_s21 = sadd.s32 4294967295, %s1887_s20   ;;  %s1221_s22 = sadd.s32 4294967294, %s1887_s20   ;;  %s1887_s20 = sphi %s1935_s20, %s23_s20   ;;  %s1883_s19 = sphi %s1933_s19, %s2458_s19   ;;  %s1879_s18 = sphi %s1931_s18, %s2457_s18   ;;  %s1875_s17 = sphi %s1929_s17, %s2456_s17   ;;  %s1871_s16 = sphi %s1927_s16, %s2455_s16   ;;  %s1867_s15 = sphi %s1925_s15, %s2454_s15  }
   0x9   : > { %p57_p0 = scmp.ne.s32.totalorder %s1871_s16, %s1867_s15  ;;  %p1959_p1 = scmp.eq.s32.totalorder %s1220_s21, 0 }
   0xa   : > { %p1963_p2 = scmp.eq.s32.totalorder %s1220_s21, 1  ;;  %p110_p3 = scmp.eq.s32.totalorder %s1221_s22, 1 }
   0xb   : > { %s2437_s23 = scalar_select %p1959_p1, 1, 0 }
   0xc   : > { %s2438_s24 = scalar_select %p1963_p2, 1, 0 }
   0xd   : > { %p1969_p4 = por %p1959_p1, %p57_p0  ;;  %p1222_p5 = scmp.ge.s32.totalorder %s1887_s20, 1 }
   0xe   : > { %p1974_p6 = por %p110_p3, %p57_p0  ;;  %p169_p7 = scmp.lt.s32.totalorder %s1887_s20, 3 }
   0xf   : > { %s2439_s25 = scalar_select %p1969_p4, 1, 0 }
  0x10   : > { %s2440_s26 = scalar_select %p1974_p6, 1, 0 }
  0x11   : > { %p1979_p8 = pnand %p1222_p5, %p169_p7  ;;  %s1889_s28 = smov [#allocation7]  }
  0x12   : > { %s181_s29 = sshll.u32 %s1889_s28, 4  ;;  %s32_s5 = sadd.s32 1, %s1883_s19  ;;  %s182_s29 = int_to_ptr.vmem [resolvable:$true] %s181_s29 }
  0x13   : > { %s2441_s27 = scalar_select %p1979_p8, 1, 0 }
  0x14   : > { %p1546_p9 = pneg %p1979_p8  ;;  %s1687_s8 = scalar_lea.hbm %s2427_s1, 8192 }
  0x15   : > { %p1688_p12 = scmp.ne.s32.totalorder %s2427_s1, %s1687_s8  ;;  %p1694_p5 = scmp.lt.u32.totalorder %s1687_s8, %s2427_s1 }
  0x16   : > { %p1988_p11 = pnand %p1546_p9, %p1959_p1 }
  0x18   : > { %p1689_p13 = pneg %p1988_p11 }
  0x1a   : > { %p1690_p0 = pnand %p1689_p13, %p1688_p12 }
  0x1c   : > { %p1691_p3 = pneg %p1690_p0 }
  0x1e   : > { %p1696_p7 = pnand %p1694_p5, %p1691_p3 }
  0x20   : > { %1699 = shalt.err (!%p1696_p7)
}
  0x21   : > { %s1700_s13 = scalar_lea.vmem %s182_s29, 8192  ;;  %p1708_p1 = scmp.lt.s32.totalorder %s182_s29, %s182_s29 }
  0x22   : > { %p1701_p9 = scmp.ne.s32.totalorder %s182_s29, %s1700_s13  ;;  %p1709_p4 = scmp.lt.s32.totalorder %s1700_s13, %s1700_s13 }
  0x24   : > { %p1703_p10 = pnand %p1701_p9, %p1689_p13  ;;  %p1710_p8 = por %p1709_p4, %p1708_p1 }
  0x26   : > { %p1704_p6 = pneg %p1703_p10 }
  0x28   : > { %p1711_p2 = pnand %p1710_p8, %p1704_p6 }
  0x2a   : > { %1714 = shalt.err (!%p1711_p2)
}
  0x2b   : > { %s2436_s14 = smov 512   ;;  %s1891_s21 = smov 32  }
  0x2c   : > { %1549 = dma.hbm_to_vmem [thread:$0]  (!%p1988_p11), %s2427_s1, 8192, %s182_s29, [#allocation8], %s2436_s14, %s2436_s14, %s1891_s21  }
  0x2d   : > { %p33_p1 = scmp.ge.s32.totalorder %s32_s5, 2  ;;  %s44_s6 = sadd.s32 1, %s1875_s17 }
  0x2e   : > { %p51_p2 = scmp.ne.s32.totalorder %s1875_s17, %s1871_s16  ;;  %p52_p4 = scmp.eq.s32.totalorder %s1887_s20, 0 }
  0x2f   : > { %s2460_s5 = smov (%p33_p1, %s32_s5), 0  ;;  %p2444_p8 = scmp.ne.s32.totalorder %s2438_s24, 0 }
  0x30   : > { %p2018_p6 = por %p52_p4, %p51_p2  ;;  %s39_s8 = ssub.s32 %s1883_s19, %s2460_s5 }
  0x31   : > { %p2024_p10 = por %p2444_p8, %p51_p2  ;;  %p1559_p12 = scmp.lt.s32.totalorder %s1887_s20, 2 }
  0x32   : > { %p42_p11 = scmp.eq.s32.totalorder %s39_s8, 0  ;;  %s195_s29 = sand.u32 1, %s1875_s17  }
  0x33   : > { %s1225_s9 = sshll.u32 %s195_s29, 7  ;;  %s1272_s11 = sshll.u32 %s1883_s19, 11 }
  0x34   : > { %s2033_s10 = scalar_select %p42_p11, %s1875_s17, %s44_s6  }
  0x35   : > { %s2039_s22 = scalar_lea.hbm %s2426_s0, %s1272_s11  ;;  %s199_s28 = scalar_lea.vmem [#allocation4], %s1225_s9 }
  0x36   : > { %s209_s14 = sshll.u32 %s199_s28, 4  ;;  %p2045_p13 = pnand %p1559_p12, %p2018_p6  ;;  %s2041_s14 = int_to_ptr.vmem [resolvable:$true] %s209_s14 }
  0x37   : > { %s2049_s6 = scalar_lea.sflag [#allocation5], %s195_s29  ;;  %s1715_s12 = scalar_lea.hbm %s2039_s22, 2048 }
  0x38   : > { %p1716_p0 = scmp.ne.s32.totalorder %s2039_s22, %s1715_s12  ;;  %p1717_p3 = pneg %p2045_p13 }
  0x39   : > { %s1720_s7 = scalar_lea.hbm %s2426_s0, 4096  ;;  %p1721_p9 = scmp.lt.u32.totalorder %s2039_s22, %s2426_s0 }
  0x3a   : > { %p1718_p5 = pnand %p1717_p3, %p1716_p0  ;;  %p1722_p1 = scmp.lt.u32.totalorder %s1720_s7, %s1715_s12 }
  0x3b   : > { %p1724_p4 = scmp.lt.u32.totalorder %s1715_s12, %s2039_s22 }
  0x3c   : > { %p1719_p7 = pneg %p1718_p5  ;;  %p1723_p2 = por %p1722_p1, %p1721_p9 }
  0x3e   : > { %p1725_p6 = por %p1724_p4, %p1723_p2 }
  0x40   : > { %p1726_p8 = pnand %p1725_p6, %p1719_p7 }
  0x42   : > { %1729 = shalt.err (!%p1726_p8)
}
  0x43   : > { %s1730_s29 = scalar_lea.vmem %s2041_s14, 2048  ;;  %s1892_s9 = smov [#allocation4]  }
  0x44   : > { %p1731_p12 = scmp.ne.s32.totalorder %s2041_s14, %s1730_s29  ;;  %s1735_s11 = sshll.u32 %s1892_s9, 4  ;;  %s1736_s11 = int_to_ptr.vmem [resolvable:$false] %s1735_s11 }
  0x45   : > { %s1737_s13 = scalar_lea.vmem %s1736_s11, 4096  ;;  %p1738_p5 = scmp.lt.s32.totalorder %s2041_s14, %s1736_s11 }
  0x46   : > { %p1733_p11 = pnand %p1731_p12, %p1717_p3  ;;  %p1739_p9 = scmp.lt.s32.totalorder %s1737_s13, %s1730_s29 }
  0x48   : > { %p1734_p0 = pneg %p1733_p11  ;;  %p1740_p1 = por %p1739_p9, %p1738_p5 }
  0x4a   : > { %p1741_p2 = pnand %p1740_p1, %p1734_p0 }
  0x4c   : > { %1744 = shalt.err (!%p1741_p2)
}
  0x4d   : > { %s2447_s12 = smov 512   ;;  %p2448_p3 = scmp.ne.s32.totalorder %s2441_s27, 0 }
  0x4e   : > { %1553 = dma.hbm_to_vmem [thread:$0]  (!%p2045_p13), %s2039_s22, 2048, %s2041_s14, %s2049_s6, %s2447_s12, %s2447_s12, %s1891_s21  }
  0x4f   : > { %221 = sbr.rel (%p2448_p3) target bundleno = 1249 (0x4e1), region = 28  ;;  %s2083_s7 = sand.u32 (!%p2448_p3), 1, %s1871_s16  }
  0x50   : > { %s1230_s28 = sshll.u32 (!%p2448_p3), %s2083_s7, 7  ;;  %s224_s29 = scalar_lea.sflag (!%p2448_p3), [#allocation5], %s2083_s7 }
  0x51   : > { %s2087_s9 = scalar_lea.vmem (!%p2448_p3), [#allocation4], %s1230_s28  ;;  %p2449_p7 = scmp.ne.s32.totalorder (!%p2448_p3), %s2439_s25, 0 }
  0x56   : > { %1850 = dma.done.wait (%p2449_p7), %s224_s29, 2048  }
  0x57   : > { %1852 = vsyncadd (%p2449_p7), %s224_s29, 4294965248  ;;  %p2450_p13 = scmp.ne.s32.totalorder %s2437_s23, 0 }
  0x59   : > { %1854 = dma.done.wait (%p2450_p13), [#allocation8], 8192  }
  0x5a   : > { %1856 = vsyncadd (%p2450_p13), [#allocation8], 4294959104  ;;  %s1232_s27 = sshll.u32 %s2083_s7, 5  ;;  %p1233_p4 = scmp.ne.s32.totalorder %s1879_s18, 0 }
  0x5b   : > { %s2098_s14 = scalar_lea.vmem [#allocation9], %s1232_s27  ;;  %v1893_v0 = vmov (!%p1233_p4), 0.0  }
  0x5c   : > { %261 = sbr.rel (%p1233_p4) target bundleno = 99 (0x63), region = 40  ;;  %262 = vst [vmem:[#allocation2] sm:$0xff] (!%p1233_p4), %v1893_v0  ;;  %263 = vst [vmem:[#allocation3] sm:$0xff] (!%p1233_p4), %v1893_v0 }
  0x63 PF: > { %v265_v1 = vld [vmem:[#allocation7 + $0x8] sm:$0xff]  ;;  %v264_v3 = vld [vmem:[#allocation7] sm:$0xff]  ;;  %v1894_v8 = vmov 0.0   ;;  %v267_v20 = vld [vmem:[#allocation7 + $0x18] sm:$0xff]  ;;  %p1261_p6 = scmp.ne.s32.totalorder %s1879_s18, 1 }
  0x64   : > { %v269_v2 = vld [vmem:[#allocation7 + $0x28] sm:$0xff]  ;;  %v268_v5 = vld [vmem:[#allocation7 + $0x20] sm:$0xff]  ;;  %397 = vmatprep.mubr.f32.mxu0 %v1894_v8  ;;  %468 = vmatprep.mubr.f32.mxu1 %v1894_v8  ;;  %v271_v21 = vld [vmem:[#allocation7 + $0x38] sm:$0xff] }
  0x65   : > { %v2101_v4 = vpack.c.bf16 %v269_v2, %v265_v1  ;;  %v273_v6 = vld [vmem:[#allocation7 + $0x48] sm:$0xff]  ;;  %v2105_v9 = vpack.c.bf16 %v268_v5, %v264_v3  ;;  %v272_v11 = vld [vmem:[#allocation7 + $0x40] sm:$0xff]  ;;  %v2116_v23 = vpack.c.bf16 %v271_v21, %v267_v20  ;;  %v266_v24 = vld [vmem:[#allocation7 + $0x10] sm:$0xff] }
  0x66   : > { %v277_v7 = vld [vmem:[#allocation7 + $0x68] sm:$0xff]  ;;  %v276_v12 = vld [vmem:[#allocation7 + $0x60] sm:$0xff]  ;;  %v270_v25 = vld [vmem:[#allocation7 + $0x30] sm:$0xff] }
  0x67   : > { %v2107_v10 = vpack.c.bf16 %v277_v7, %v273_v6  ;;  %v281_v13 = vld [vmem:[#allocation7 + $0x88] sm:$0xff]  ;;  %1275 = vmatprep.subr.bf16.mxu0 %v2101_v4  ;;  %v2111_v15 = vpack.c.bf16 %v276_v12, %v272_v11  ;;  %v280_v16 = vld [vmem:[#allocation7 + $0x80] sm:$0xff]  ;;  %v2118_v26 = vpack.c.bf16 %v270_v25, %v266_v24  ;;  %1307 = vmatprep.subr.bf16.mxu1 %v2116_v23  ;;  %v275_v28 = vld [vmem:[#allocation7 + $0x58] sm:$0xff] }
  0x68   : > { %v285_v14 = vld [vmem:[#allocation7 + $0xa8] sm:$0xff]  ;;  %1277 = vmatpush1.bf16.msra.mxu0 %v2105_v9  ;;  %v284_v17 = vld [vmem:[#allocation7 + $0xa0] sm:$0xff]  ;;  %v279_v29 = vld [vmem:[#allocation7 + $0x78] sm:$0xff] }
  0x69   : > { %1279 = vmatprep.subr.bf16.mxu0 %v2107_v10  ;;  %v2114_v18 = vpack.c.bf16 %v285_v14, %v281_v13  ;;  %v289_v19 = vld [vmem:[#allocation7 + $0xc8] sm:$0xff]  ;;  %v2121_v27 = vpack.c.bf16 %v284_v17, %v280_v16  ;;  %v274_v30 = vld [vmem:[#allocation7 + $0x50] sm:$0xff]  ;;  %v288_v32 = vld [vmem:[#allocation7 + $0xc0] sm:$0xff]  ;;  %1309 = vmatpush1.bf16.msra.mxu1 %v2118_v26  ;;  %v2128_v34 = vpack.c.bf16 %v279_v29, %v275_v28 }
  0x6a   : > { %v293_v22 = vld [vmem:[#allocation7 + $0xe8] sm:$0xff]  ;;  %v292_v33 = vld [vmem:[#allocation7 + $0xe0] sm:$0xff]  ;;  %v278_v35 = vld [vmem:[#allocation7 + $0x70] sm:$0xff] }
  0x6b   : > { %v2125_v31 = vpack.c.bf16 %v293_v22, %v289_v19  ;;  %v297_v36 = vld [vmem:[#allocation7 + $0x108] sm:$0xff]  ;;  %v2130_v38 = vpack.c.bf16 %v278_v35, %v274_v30  ;;  %v283_v39 = vld [vmem:[#allocation7 + $0x98] sm:$0xff]  ;;  %1311 = vmatprep.subr.bf16.mxu1 %v2128_v34  ;;  %v282_v41 = vld [vmem:[#allocation7 + $0x90] sm:$0xff]  ;;  %v2134_v43 = vpack.c.bf16 %v292_v33, %v288_v32 }
  0x6c   : > { %1281 = vmatpush1.bf16.msra.mxu0 %v2111_v15  ;;  %v301_v37 = vld [vmem:[#allocation7 + $0x128] sm:$0xff]  ;;  %v287_v40 = vld [vmem:[#allocation7 + $0xb8] sm:$0xff]  ;;  %v286_v42 = vld [vmem:[#allocation7 + $0xb0] sm:$0xff] }
  0x6d   : > { %1283 = vmatprep.subr.bf16.mxu0 %v2114_v18  ;;  %v296_v44 = vld [vmem:[#allocation7 + $0x100] sm:$0xff]  ;;  %v2136_v46 = vpack.c.bf16 %v287_v40, %v283_v39  ;;  %v2139_v47 = vpack.c.bf16 %v301_v37, %v297_v36  ;;  %1313 = vmatpush1.bf16.msra.mxu1 %v2130_v38  ;;  %v305_v48 = vld [vmem:[#allocation7 + $0x148] sm:$0xff]  ;;  %v2142_v49 = vpack.c.bf16 %v286_v42, %v282_v41  ;;  %v291_v50 = vld [vmem:[#allocation7 + $0xd8] sm:$0xff] }
  0x6e   : > { %v300_v45 = vld [vmem:[#allocation7 + $0x120] sm:$0xff]  ;;  %v295_v51 = vld [vmem:[#allocation7 + $0xf8] sm:$0xff]  ;;  %v309_v52 = vld [vmem:[#allocation7 + $0x168] sm:$0xff] }
  0x6f   : > { %1315 = vmatprep.subr.bf16.mxu1 %v2136_v46  ;;  %v2145_v53 = vpack.c.bf16 %v295_v51, %v291_v50  ;;  %v290_v54 = vld [vmem:[#allocation7 + $0xd0] sm:$0xff]  ;;  %v2148_v56 = vpack.c.bf16 %v300_v45, %v296_v44  ;;  %v299_v57 = vld [vmem:[#allocation7 + $0x118] sm:$0xff]  ;;  %v2151_v59 = vpack.c.bf16 %v309_v52, %v305_v48  ;;  %v304_v60 = vld [vmem:[#allocation7 + $0x140] sm:$0xff] }
  0x70   : > { %1285 = vmatpush1.bf16.msra.mxu0 %v2121_v27  ;;  %v294_v55 = vld [vmem:[#allocation7 + $0xf0] sm:$0xff]  ;;  %v303_v58 = vld [vmem:[#allocation7 + $0x138] sm:$0xff]  ;;  %v308_v61 = vld [vmem:[#allocation7 + $0x160] sm:$0xff] }
  0x71   : > { %1287 = vmatprep.subr.bf16.mxu0 %v2125_v31  ;;  %1317 = vmatpush1.bf16.msra.mxu1 %v2142_v49  ;;  %v313_v62 = vld [vmem:[#allocation7 + $0x188] sm:$0xff]  ;;  %v2154_v63 = vpack.c.bf16 %v294_v55, %v290_v54  ;;  %v2157_v1 = vpack.c.bf16 %v303_v58, %v299_v57  ;;  %v298_v2 = vld [vmem:[#allocation7 + $0x110] sm:$0xff]  ;;  %v307_v5 = vld [vmem:[#allocation7 + $0x158] sm:$0xff]  ;;  %v2160_v7 = vpack.c.bf16 %v308_v61, %v304_v60 }
  0x72   : > { %v317_v0 = vld [vmem:[#allocation7 + $0x1a8] sm:$0xff]  ;;  %1319 = vmatprep.subr.bf16.mxu1 %v2145_v53  ;;  %v302_v3 = vld [vmem:[#allocation7 + $0x130] sm:$0xff]  ;;  %v311_v6 = vld [vmem:[#allocation7 + $0x178] sm:$0xff] }
  0x73   : > { %v2163_v11 = vpack.c.bf16 %v317_v0, %v313_v62  ;;  %v312_v12 = vld [vmem:[#allocation7 + $0x180] sm:$0xff]  ;;  %v321_v14 = vld [vmem:[#allocation7 + $0x1c8] sm:$0xff]  ;;  %v2166_v16 = vpack.c.bf16 %v302_v3, %v298_v2  ;;  %v2169_v19 = vpack.c.bf16 %v311_v6, %v307_v5  ;;  %v306_v20 = vld [vmem:[#allocation7 + $0x150] sm:$0xff] }
  0x74   : > { %1289 = vmatpush1.bf16.msra.mxu0 %v2134_v43  ;;  %v316_v13 = vld [vmem:[#allocation7 + $0x1a0] sm:$0xff]  ;;  %v325_v17 = vld [vmem:[#allocation7 + $0x1e8] sm:$0xff]  ;;  %v310_v21 = vld [vmem:[#allocation7 + $0x170] sm:$0xff] }
  0x75   : > { %1291 = vmatprep.subr.bf16.mxu0 %v2139_v47  ;;  %1321 = vmatpush1.bf16.msra.mxu1 %v2154_v63  ;;  %v315_v22 = vld [vmem:[#allocation7 + $0x198] sm:$0xff]  ;;  %v2172_v25 = vpack.c.bf16 %v316_v13, %v312_v12  ;;  %v2175_v28 = vpack.c.bf16 %v325_v17, %v321_v14  ;;  %v320_v29 = vld [vmem:[#allocation7 + $0x1c0] sm:$0xff]  ;;  %v2178_v32 = vpack.c.bf16 %v310_v21, %v306_v20  ;;  %v314_v35 = vld [vmem:[#allocation7 + $0x190] sm:$0xff] }
  0x76   : > { %1323 = vmatprep.subr.bf16.mxu1 %v2157_v1  ;;  %v319_v24 = vld [vmem:[#allocation7 + $0x1b8] sm:$0xff]  ;;  %v324_v30 = vld [vmem:[#allocation7 + $0x1e0] sm:$0xff]  ;;  %v318_v36 = vld [vmem:[#allocation7 + $0x1b0] sm:$0xff] }
  0x77   : > { %v2181_v33 = vpack.c.bf16 %v319_v24, %v315_v22  ;;  %v323_v37 = vld [vmem:[#allocation7 + $0x1d8] sm:$0xff]  ;;  %v2184_v40 = vpack.c.bf16 %v324_v30, %v320_v29  ;;  %v2188_v41 = vpack.c.bf16 %v318_v36, %v314_v35  ;;  %v322_v44 = vld [vmem:[#allocation7 + $0x1d0] sm:$0xff]  ;;  %v328_v51 = vld [vmem:[%s2087_s9] sm:$0xff] }
  0x78   : > { %1293 = vmatpush1.bf16.msra.mxu0 %v2148_v56  ;;  %v327_v39 = vld [vmem:[#allocation7 + $0x1f8] sm:$0xff]  ;;  %v326_v45 = vld [vmem:[#allocation7 + $0x1f0] sm:$0xff]  ;;  %v329_v52 = vld [vmem:[%s2087_s9 + $0x8] sm:$0xff] }
  0x79   : > { %1295 = vmatprep.subr.bf16.mxu0 %v2151_v59  ;;  %1325 = vmatpush1.bf16.msra.mxu1 %v2166_v16  ;;  %v2191_v42 = vpack.c.bf16 %v327_v39, %v323_v37  ;;  %v332_v48 = vld [vmem:[#allocation2] sm:$0xff]  ;;  %v2195_v50 = vpack.c.bf16 %v326_v45, %v322_v44  ;;  %v331_v5 = vld [vmem:[%s2087_s9 + $0x18] sm:$0xff] }
  0x7a   : > { %1327 = vmatprep.subr.bf16.mxu1 %v2169_v19  ;;  %v330_v62 = vld [vmem:[%s2087_s9 + $0x10] sm:$0xff]  ;;  %v498_v24 = vld [vmem:[#allocation3] sm:$0xff] }
  0x7c   : > { %1297 = vmatpush1.bf16.msra.mxu0 %v2160_v7 }
  0x7d   : > { %1299 = vmatprep.subr.bf16.mxu0 %v2163_v11  ;;  %1329 = vmatpush1.bf16.msra.mxu1 %v2178_v32 }
  0x7e   : > { %1331 = vmatprep.subr.bf16.mxu1 %v2181_v33 }
  0x80   : > { %1301 = vmatpush1.bf16.msra.mxu0 %v2172_v25 }
  0x81   : > { %1303 = vmatprep.subr.bf16.mxu0 %v2175_v28  ;;  %1333 = vmatpush1.bf16.msra.mxu1 %v2188_v41 }
  0x82   : > { %1335 = vmatprep.subr.bf16.mxu1 %v2191_v42 }
  0x84   : > { %1305 = vmatpush1.bf16.msra.mxu0 %v2184_v40 }
  0x85   : > { %1339 = vmatprep.subr.bf16.mxu0 %v2101_v4  ;;  %1337 = vmatpush1.bf16.msra.mxu1 %v2195_v50 }
  0x86   : > { %1371 = vmatprep.subr.bf16.mxu1 %v2116_v23 }
  0x87   : > { %398 = vmatmul.mubr.f32.vlgmr.msra.gmra.mrb[0].mxu0 %v332_v48 }
  0x88   : > { %1341 = vmatpush1.bf16.msra.mxu0 %v2105_v9  ;;  %577 = vmatprep.mubr.f32.mxu0 %v1894_v8 }
  0x89   : > { %1343 = vmatprep.subr.bf16.mxu0 %v2107_v10  ;;  %469 = vmatmul.mubr.f32.vlgmr.msra.gmra.mrb[0].mxu1 %v332_v48 }
  0x8a   : > { %1373 = vmatpush1.bf16.msra.mxu1 %v2118_v26  ;;  %648 = vmatprep.mubr.f32.mxu1 %v1894_v8 }
  0x8b   : > { %1375 = vmatprep.subr.bf16.mxu1 %v2128_v34 }
  0x8c   : > { %1345 = vmatpush1.bf16.msra.mxu0 %v2111_v15 }
  0x8d   : > { %1347 = vmatprep.subr.bf16.mxu0 %v2114_v18 }
  0x8e   : > { %1377 = vmatpush1.bf16.msra.mxu1 %v2130_v38 }
  0x8f   : > { %1379 = vmatprep.subr.bf16.mxu1 %v2136_v46 }
  0x90   : > { %1349 = vmatpush1.bf16.msra.mxu0 %v2121_v27 }
  0x91   : > { %1351 = vmatprep.subr.bf16.mxu0 %v2125_v31 }
  0x92   : > { %1381 = vmatpush1.bf16.msra.mxu1 %v2142_v49 }
  0x93   : > { %1383 = vmatprep.subr.bf16.mxu1 %v2145_v53 }
  0x94   : > { %1353 = vmatpush1.bf16.msra.mxu0 %v2134_v43 }
  0x95   : > { %1355 = vmatprep.subr.bf16.mxu0 %v2139_v47 }
  0x96   : > { %1385 = vmatpush1.bf16.msra.mxu1 %v2154_v63 }
  0x97   : > { %1387 = vmatprep.subr.bf16.mxu1 %v2157_v1 }
  0x98   : > { %1357 = vmatpush1.bf16.msra.mxu0 %v2148_v56 }
  0x99   : > { %1359 = vmatprep.subr.bf16.mxu0 %v2151_v59 }
  0x9a   : > { %1389 = vmatpush1.bf16.msra.mxu1 %v2166_v16 }
  0x9b   : > { %1391 = vmatprep.subr.bf16.mxu1 %v2169_v19 }
  0x9c   : > { %1361 = vmatpush1.bf16.msra.mxu0 %v2160_v7 }
  0x9d   : > { %1363 = vmatprep.subr.bf16.mxu0 %v2163_v11 }
  0x9e   : > { %1393 = vmatpush1.bf16.msra.mxu1 %v2178_v32 }
  0x9f   : > { %1395 = vmatprep.subr.bf16.mxu1 %v2181_v33 }
  0xa0   : > { %1365 = vmatpush1.bf16.msra.mxu0 %v2172_v25 }
  0xa1   : > { %1367 = vmatprep.subr.bf16.mxu0 %v2175_v28 }
  0xa2   : > { %1397 = vmatpush1.bf16.msra.mxu1 %v2188_v41 }
  0xa3   : > { %1399 = vmatprep.subr.bf16.mxu1 %v2191_v42 }
  0xa4   : > { %1369 = vmatpush1.bf16.msra.mxu0 %v2184_v40 }
  0xa5   : > { %1403 = vmatprep.subr.bf16.mxu0 %v2101_v4 }
  0xa6   : > { %1401 = vmatpush1.bf16.msra.mxu1 %v2195_v50 }
  0xa7   : > { %1435 = vmatprep.subr.bf16.mxu1 %v2116_v23 }
 0x15a   : > { %v399_v54 = vpop.f32.mrb[0].mxu0 }
 0x15b   : > { %v475_v55 = vadd.f32 %v399_v54, %v328_v51  ;;  %v401_v57 = vpop.f32.mrb[1].mxu0  ;;  %v1237_v51 = vld [vmem:[%s2087_s9 + $0x20] sm:$0xff] }
 0x15c   : > { %v476_v58 = vadd.f32 %v401_v57, %v329_v52  ;;  %v470_v0 = vpop.f32.mrb[0].mxu1  ;;  %v1238_v52 = vld [vmem:[%s2087_s9 + $0x28] sm:$0xff] }
 0x15d   : > { %v1234_v60 = vmul.f32 -1.442695, %v475_v55  ;;  %v472_v2 = vpop.f32.mrb[1].mxu1  ;;  %v477_v3 = vadd.f32 %v470_v0, %v330_v62 }
 0x15e   : > { %v1235_v61 = vmul.f32 -1.442695, %v476_v58  ;;  %v478_v12 = vadd.f32 %v472_v2, %v331_v5  ;;  %v1239_v2 = vld [vmem:[%s2087_s9 + $0x30] sm:$0xff]  ;;  %v1240_v5 = vld [vmem:[%s2087_s9 + $0x38] sm:$0xff] }
 0x15f   : > { %1623 = vpow2.f32 %v1234_v60  ;;  %v1236_v6 = vmul.f32 -1.442695, %v477_v3 }
 0x160   : > { %1625 = vpow2.f32 %v1235_v61 }
 0x161   : > { %1627 = vpow2.f32 %v1236_v6 }
 0x162   : > { %1629 = vtanh.f32 %v478_v12 }
 0x169   : > { %v1624_v13 = vpop.eup %1623 }
 0x16a   : > { %v1626_v14 = vpop.eup %1625  ;;  %v488_v17 = vadd.f32 1.0, %v1624_v13 }
 0x16b   : > { %v489_v20 = vadd.f32 1.0, %v1626_v14  ;;  %v1628_v21 = vpop.eup %1627 }
 0x16c   : > { %1631 = vrcp.f32 %v488_v17  ;;  %v1630_v22 = vpop.eup %1629  ;;  %v490_v30 = vadd.f32 1.0, %v1628_v21 }
 0x16d   : > { %1633 = vrcp.f32 %v489_v20 }
 0x16e   : > { %1635 = vrcp.f32 %v490_v30 }
 0x176   : > { %v1632_v29 = vpop.eup %1631 }
 0x177   : > { %v1634_v35 = vpop.eup %1633  ;;  %v500_v36 = vmul.f32 %v1632_v29, %v1630_v22 }
 0x178   : > { %v499_v37 = vmul.f32 %v1634_v35, %v498_v24  ;;  %v1636_v44 = vpop.eup %1635 }
 0x17a   : > { %v2239_v39 = vadd.f32 %v500_v36, %v499_v37 }
 0x17c   : > { %1637 = vtanh.f32 %v2239_v39 }
 0x186   : > { %v1638_v45 = vpop.eup %1637 }
 0x187   : > { %v503_v48 = vmul.f32 %v1638_v45, %v1636_v44 }
 0x189   : > { %506 = vst [vmem:[%s2098_s14] sm:$0xff] %v503_v48  ;;  %578 = vmatmul.mubr.f32.vlgmr.msra.gmra.mrb[2].mxu0 %v503_v48  ;;  %649 = vmatmul.mubr.f32.vlgmr.msra.gmra.mrb[2].mxu1 %v503_v48 }
 0x18a   : > { %1405 = vmatpush1.bf16.msra.mxu0 %v2105_v9  ;;  %1437 = vmatpush1.bf16.msra.mxu1 %v2118_v26 }
 0x18b   : > { %1407 = vmatprep.subr.bf16.mxu0 %v2107_v10  ;;  %1439 = vmatprep.subr.bf16.mxu1 %v2128_v34 }
 0x18c   : > { %758 = vmatprep.mubr.f32.mxu0 %v1894_v8  ;;  %829 = vmatprep.mubr.f32.mxu1 %v1894_v8 }
 0x18e   : > { %1409 = vmatpush1.bf16.msra.mxu0 %v2111_v15  ;;  %1441 = vmatpush1.bf16.msra.mxu1 %v2130_v38 }
 0x18f   : > { %1411 = vmatprep.subr.bf16.mxu0 %v2114_v18  ;;  %1443 = vmatprep.subr.bf16.mxu1 %v2136_v46 }
 0x192   : > { %1413 = vmatpush1.bf16.msra.mxu0 %v2121_v27  ;;  %1445 = vmatpush1.bf16.msra.mxu1 %v2142_v49 }
 0x193   : > { %1415 = vmatprep.subr.bf16.mxu0 %v2125_v31  ;;  %1447 = vmatprep.subr.bf16.mxu1 %v2145_v53 }
 0x196   : > { %1417 = vmatpush1.bf16.msra.mxu0 %v2134_v43  ;;  %1449 = vmatpush1.bf16.msra.mxu1 %v2154_v63 }
 0x197   : > { %1419 = vmatprep.subr.bf16.mxu0 %v2139_v47  ;;  %1451 = vmatprep.subr.bf16.mxu1 %v2157_v1 }
 0x19a   : > { %1421 = vmatpush1.bf16.msra.mxu0 %v2148_v56  ;;  %1453 = vmatpush1.bf16.msra.mxu1 %v2166_v16 }
 0x19b   : > { %1423 = vmatprep.subr.bf16.mxu0 %v2151_v59  ;;  %1455 = vmatprep.subr.bf16.mxu1 %v2169_v19 }
 0x19e   : > { %1425 = vmatpush1.bf16.msra.mxu0 %v2160_v7  ;;  %1457 = vmatpush1.bf16.msra.mxu1 %v2178_v32 }
 0x19f   : > { %1427 = vmatprep.subr.bf16.mxu0 %v2163_v11  ;;  %1459 = vmatprep.subr.bf16.mxu1 %v2181_v33 }
 0x1a2   : > { %1429 = vmatpush1.bf16.msra.mxu0 %v2172_v25  ;;  %1461 = vmatpush1.bf16.msra.mxu1 %v2188_v41 }
 0x1a3   : > { %1431 = vmatprep.subr.bf16.mxu0 %v2175_v28  ;;  %1463 = vmatprep.subr.bf16.mxu1 %v2191_v42 }
 0x1a6   : > { %1433 = vmatpush1.bf16.msra.mxu0 %v2184_v40  ;;  %1465 = vmatpush1.bf16.msra.mxu1 %v2195_v50 }
 0x1a7   : > { %1467 = vmatprep.subr.bf16.mxu0 %v2101_v4  ;;  %1499 = vmatprep.subr.bf16.mxu1 %v2116_v23 }
 0x25c   : > { %v579_v54 = vpop.f32.mrb[2].mxu0  ;;  %v650_v55 = vpop.f32.mrb[2].mxu1 }
 0x25d   : > { %v655_v57 = vadd.f32 %v1237_v51, %v579_v54  ;;  %v581_v58 = vpop.f32.mrb[3].mxu0  ;;  %v652_v60 = vpop.f32.mrb[3].mxu1  ;;  %v657_v3 = vadd.f32 %v1239_v2, %v650_v55 }
 0x25e   : > { %v656_v61 = vadd.f32 %v1238_v52, %v581_v58  ;;  %v658_v6 = vadd.f32 %v1240_v5, %v652_v60  ;;  %v1255_v60 = vld [vmem:[%s2087_s9 + $0x70] sm:$0xff] }
 0x25f   : > { %v1241_v62 = vmul.f32 -1.442695, %v655_v57  ;;  %v1243_v4 = vmul.f32 -1.442695, %v657_v3 }
 0x260   : > { %v1242_v0 = vmul.f32 -1.442695, %v656_v61 }
 0x261   : > { %1639 = vpow2.f32 %v1241_v62  ;;  %v1256_v62 = vld [vmem:[%s2087_s9 + $0x78] sm:$0xff] }
 0x262   : > { %1641 = vpow2.f32 %v1242_v0 }
 0x263   : > { %1643 = vtanh.f32 %v658_v6 }
 0x264   : > { %1645 = vpow2.f32 %v1243_v4 }
 0x26b   : > { %v1640_v12 = vpop.eup %1639 }
 0x26c   : > { %v668_v13 = vadd.f32 1.0, %v1640_v12  ;;  %v1642_v23 = vpop.eup %1641 }
 0x26d   : > { %v669_v14 = vadd.f32 1.0, %v1642_v23  ;;  %v1644_v17 = vpop.eup %1643 }
 0x26e   : > { %1647 = vrcp.f32 %v668_v13  ;;  %v1646_v20 = vpop.eup %1645 }
 0x26f   : > { %1649 = vrcp.f32 %v669_v14  ;;  %v670_v29 = vadd.f32 1.0, %v1646_v20 }
 0x271   : > { %1651 = vrcp.f32 %v670_v29 }
 0x278   : > { %v1648_v21 = vpop.eup %1647 }
 0x279   : > { %v680_v22 = vmul.f32 %v1648_v21, %v1644_v17  ;;  %v1650_v24 = vpop.eup %1649 }
 0x27a   : > { %v679_v30 = vmul.f32 %v1650_v24, %v2239_v39  ;;  %v1254_v39 = vld [vmem:[%s2087_s9 + $0x68] sm:$0xff] }
 0x27b   : > { %v1652_v36 = vpop.eup %1651 }
 0x27c   : > { %v2282_v35 = vadd.f32 %v680_v22, %v679_v30 }
 0x27e   : > { %1653 = vtanh.f32 %v2282_v35 }
 0x288   : > { %v1654_v37 = vpop.eup %1653 }
 0x289   : > { %v683_v44 = vmul.f32 %v1654_v37, %v1652_v36 }
 0x28b   : > { %1244 = vst [vmem:[%s2098_s14 + $0x8] sm:$0xff] %v683_v44  ;;  %759 = vmatmul.mubr.f32.vlgmr.msra.gmra.mrb[4].mxu0 %v683_v44  ;;  %830 = vmatmul.mubr.f32.vlgmr.msra.gmra.mrb[4].mxu1 %v683_v44 }
 0x28c   : > { %1469 = vmatpush1.bf16.msra.mxu0 %v2105_v9  ;;  %1501 = vmatpush1.bf16.msra.mxu1 %v2118_v26  ;;  %v1246_v9 = vld [vmem:[%s2087_s9 + $0x48] sm:$0xff] }
 0x28d   : > { %1471 = vmatprep.subr.bf16.mxu0 %v2107_v10  ;;  %1503 = vmatprep.subr.bf16.mxu1 %v2128_v34 }
 0x28e   : > { %939 = vmatprep.mubr.f32.mxu0 %v1894_v8  ;;  %1010 = vmatprep.mubr.f32.mxu1 %v1894_v8  ;;  %v1245_v8 = vld [vmem:[%s2087_s9 + $0x40] sm:$0xff] }
 0x290   : > { %1473 = vmatpush1.bf16.msra.mxu0 %v2111_v15  ;;  %1505 = vmatpush1.bf16.msra.mxu1 %v2130_v38 }
 0x291   : > { %1475 = vmatprep.subr.bf16.mxu0 %v2114_v18  ;;  %1507 = vmatprep.subr.bf16.mxu1 %v2136_v46 }
 0x294   : > { %1477 = vmatpush1.bf16.msra.mxu0 %v2121_v27  ;;  %1509 = vmatpush1.bf16.msra.mxu1 %v2142_v49 }
 0x295   : > { %1479 = vmatprep.subr.bf16.mxu0 %v2125_v31  ;;  %1511 = vmatprep.subr.bf16.mxu1 %v2145_v53 }
 0x298   : > { %1481 = vmatpush1.bf16.msra.mxu0 %v2134_v43  ;;  %1513 = vmatpush1.bf16.msra.mxu1 %v2154_v63  ;;  %v1247_v43 = vld [vmem:[%s2087_s9 + $0x50] sm:$0xff] }
 0x299   : > { %1483 = vmatprep.subr.bf16.mxu0 %v2139_v47  ;;  %1515 = vmatprep.subr.bf16.mxu1 %v2157_v1  ;;  %v1248_v47 = vld [vmem:[%s2087_s9 + $0x58] sm:$0xff] }
 0x29c   : > { %1485 = vmatpush1.bf16.msra.mxu0 %v2148_v56  ;;  %1517 = vmatpush1.bf16.msra.mxu1 %v2166_v16 }
 0x29d   : > { %1487 = vmatprep.subr.bf16.mxu0 %v2151_v59  ;;  %1519 = vmatprep.subr.bf16.mxu1 %v2169_v19 }
 0x2a0   : > { %1489 = vmatpush1.bf16.msra.mxu0 %v2160_v7  ;;  %1521 = vmatpush1.bf16.msra.mxu1 %v2178_v32 }
 0x2a1   : > { %1491 = vmatprep.subr.bf16.mxu0 %v2163_v11  ;;  %1523 = vmatprep.subr.bf16.mxu1 %v2181_v33 }
 0x2a4   : > { %1493 = vmatpush1.bf16.msra.mxu0 %v2172_v25  ;;  %1525 = vmatpush1.bf16.msra.mxu1 %v2188_v41 }
 0x2a5   : > { %1495 = vmatprep.subr.bf16.mxu0 %v2175_v28  ;;  %1527 = vmatprep.subr.bf16.mxu1 %v2191_v42 }
 0x2a8   : > { %1497 = vmatpush1.bf16.msra.mxu0 %v2184_v40  ;;  %1529 = vmatpush1.bf16.msra.mxu1 %v2195_v50  ;;  %v1253_v50 = vld [vmem:[%s2087_s9 + $0x60] sm:$0xff] }
 0x35e   : > { %v760_v10 = vpop.f32.mrb[4].mxu0  ;;  %v831_v15 = vpop.f32.mrb[4].mxu1 }
 0x35f   : > { %v836_v18 = vadd.f32 %v1245_v8, %v760_v10  ;;  %v762_v26 = vpop.f32.mrb[5].mxu0  ;;  %v833_v27 = vpop.f32.mrb[5].mxu1  ;;  %v838_v46 = vadd.f32 %v1247_v43, %v831_v15 }
 0x360   : > { %v837_v31 = vadd.f32 %v1246_v9, %v762_v26  ;;  %v839_v49 = vadd.f32 %v1248_v47, %v833_v27 }
 0x361   : > { %v1249_v34 = vmul.f32 -1.442695, %v836_v18  ;;  %v1251_v53 = vmul.f32 -1.442695, %v838_v46 }
 0x362   : > { %v1250_v38 = vmul.f32 -1.442695, %v837_v31 }
 0x363   : > { %1655 = vpow2.f32 %v1249_v34 }
 0x364   : > { %1657 = vpow2.f32 %v1250_v38 }
 0x365   : > { %1659 = vtanh.f32 %v839_v49 }
 0x366   : > { %1661 = vpow2.f32 %v1251_v53 }
 0x36d   : > { %v1656_v56 = vpop.eup %1655 }
 0x36e   : > { %v849_v59 = vadd.f32 1.0, %v1656_v56  ;;  %v1658_v63 = vpop.eup %1657 }
 0x36f   : > { %v850_v1 = vadd.f32 1.0, %v1658_v63  ;;  %v1660_v7 = vpop.eup %1659 }
 0x370   : > { %1663 = vrcp.f32 %v849_v59  ;;  %v1662_v11 = vpop.eup %1661 }
 0x371   : > { %1665 = vrcp.f32 %v850_v1  ;;  %v851_v28 = vadd.f32 1.0, %v1662_v11 }
 0x373   : > { %1667 = vrcp.f32 %v851_v28 }
 0x37a   : > { %v1664_v16 = vpop.eup %1663 }
 0x37b   : > { %v861_v19 = vmul.f32 %v1664_v16, %v1660_v7  ;;  %v1666_v25 = vpop.eup %1665 }
 0x37c   : > { %v860_v32 = vmul.f32 %v1666_v25, %v2282_v35 }
 0x37d   : > { %v1668_v40 = vpop.eup %1667 }
 0x37e   : > { %v862_v33 = vadd.f32 %v861_v19, %v860_v32 }
 0x380   : > { %1669 = vtanh.f32 %v862_v33 }
 0x38a   : > { %v1670_v41 = vpop.eup %1669 }
 0x38b   : > { %v864_v42 = vmul.f32 %v1670_v41, %v1668_v40 }
 0x38d   : > { %1252 = vst [vmem:[%s2098_s14 + $0x10] sm:$0xff] %v864_v42  ;;  %940 = vmatmul.mubr.f32.vlgmr.msra.gmra.mrb[6].mxu0 %v864_v42  ;;  %1011 = vmatmul.mubr.f32.vlgmr.msra.gmra.mrb[6].mxu1 %v864_v42 }
 0x460   : > { %v941_v45 = vpop.f32.mrb[6].mxu0  ;;  %v1012_v48 = vpop.f32.mrb[6].mxu1 }
 0x461   : > { %v1017_v51 = vadd.f32 %v1253_v50, %v941_v45  ;;  %v943_v52 = vpop.f32.mrb[7].mxu0  ;;  %v1014_v54 = vpop.f32.mrb[7].mxu1  ;;  %v1019_v61 = vadd.f32 %v1255_v60, %v1012_v48 }
 0x462   : > { %v1018_v55 = vadd.f32 %v1254_v39, %v943_v52  ;;  %v1020_v0 = vadd.f32 %v1256_v62, %v1014_v54 }
 0x463   : > { %v1257_v57 = vmul.f32 -1.442695, %v1017_v51  ;;  %v1259_v2 = vmul.f32 -1.442695, %v1019_v61 }
 0x464   : > { %v1258_v58 = vmul.f32 -1.442695, %v1018_v55 }
 0x465   : > { %1671 = vpow2.f32 %v1257_v57 }
 0x466   : > { %1673 = vpow2.f32 %v1258_v58 }
 0x467   : > { %1675 = vtanh.f32 %v1020_v0 }
 0x468   : > { %1677 = vpow2.f32 %v1259_v2 }
 0x46f   : > { %v1672_v3 = vpop.eup %1671 }
 0x470   : > { %v1030_v5 = vadd.f32 1.0, %v1672_v3  ;;  %v1674_v6 = vpop.eup %1673 }
 0x471   : > { %v1031_v4 = vadd.f32 1.0, %v1674_v6  ;;  %v1676_v12 = vpop.eup %1675 }
 0x472   : > { %1679 = vrcp.f32 %v1030_v5  ;;  %v1678_v13 = vpop.eup %1677 }
 0x473   : > { %1681 = vrcp.f32 %v1031_v4  ;;  %v1032_v20 = vadd.f32 1.0, %v1678_v13 }
 0x475   : > { %1683 = vrcp.f32 %v1032_v20 }
 0x47c   : > { %v1680_v23 = vpop.eup %1679 }
 0x47d   : > { %v1042_v14 = vmul.f32 %v1680_v23, %v1676_v12  ;;  %v1682_v17 = vpop.eup %1681 }
 0x47e   : > { %v1041_v21 = vmul.f32 %v1682_v17, %v862_v33 }
 0x47f   : > { %v1684_v24 = vpop.eup %1683 }
 0x480   : > { %v1043_v22 = vadd.f32 %v1042_v14, %v1041_v21 }
 0x482   : > { %1685 = vtanh.f32 %v1043_v22  ;;  %1046 = vst [vmem:[#allocation3] sm:$0xff] %v1043_v22 }
 0x489   : > { %1053 = sbr.rel (%p1261_p6) target bundleno = 1176 (0x498), region = 44  ;;  %v1056_v36 = vld [vmem:[#allocation3] sm:$0xff] (!%p1261_p6) }
 0x48a   : > { %1057 = vst [vmem:[#allocation12] sm:$0xff] (!%p1261_p6), %v1056_v36 }
 0x48c   : > { %v1686_v29 = vpop.eup %1685 }
 0x48d   : > { %v1045_v30 = vmul.f32 %v1686_v29, %v1684_v24 }
 0x48f   : > { %1047 = vst [vmem:[#allocation2] sm:$0xff] %v1045_v30  ;;  %1260 = vst [vmem:[%s2098_s14 + $0x18] sm:$0xff] %v1045_v30 }
 0x496   : > { %v1054_v35 = vld [vmem:[#allocation2] sm:$0xff] }
 0x497   : > { %1055 = vst [vmem:[#allocation10] sm:$0xff] %v1054_v35 }
 0x498 PF: > { %s1895_s23 = smov [#allocation10]   ;;  %s1273_s21 = sshll.u32 %s1879_s18, 9 }
 0x499   : > { %s1089_s25 = sshll.u32 %s1895_s23, 4  ;;  %p2451_p12 = scmp.ne.s32.totalorder %s2438_s24, 0  ;;  %s1090_s25 = int_to_ptr.vmem [resolvable:$true] %s1089_s25 }
 0x49a   : > { %s1745_s22 = scalar_lea.vmem %s1090_s25, 128  ;;  %p1752_p5 = scmp.lt.s32.totalorder %s1090_s25, %s1090_s25 }
 0x49b   : > { %p1746_p8 = scmp.ne.s32.totalorder %s1090_s25, %s1745_s22  ;;  %p1753_p9 = scmp.lt.s32.totalorder %s1745_s22, %s1745_s22 }
 0x49d   : > { %p1747_p11 = pnand %p1746_p8, %p2451_p12  ;;  %p1754_p1 = por %p1753_p9, %p1752_p5 }
 0x49f   : > { %p1748_p0 = pneg %p1747_p11 }
 0x4a1   : > { %p1755_p2 = pnand %p1754_p1, %p1748_p0 }
 0x4a3   : > { %1758 = shalt.err (!%p1755_p2)
}
 0x4a4   : > { %s1759_s11 = scalar_lea.hbm %s2429_s3, 128 }
 0x4a5   : > { %p1760_p3 = scmp.ne.s32.totalorder %s2429_s3, %s1759_s11  ;;  %p1765_p4 = scmp.lt.u32.totalorder %s1759_s11, %s2429_s3 }
 0x4a7   : > { %p1761_p7 = pnand %p1760_p3, %p2451_p12 }
 0x4a9   : > { %p1762_p13 = pneg %p1761_p7 }
 0x4ab   : > { %p1767_p6 = pnand %p1765_p4, %p1762_p13 }
 0x4ad   : > { %1770 = shalt.err (!%p1767_p6)
}
 0x4ae   : > { %1538 = dma.vmem_to_hbm [thread:$0]  (%p2451_p12), %s1090_s25, 128, %s2429_s3, [#allocation11]  }
 0x4af   : > { %s2352_s22 = scalar_lea.hbm %s2428_s2, %s1273_s21  ;;  %s1073_s8 = sshll.u32 %s2098_s14, 4  ;;  %s2355_s8 = int_to_ptr.vmem [resolvable:$true] %s1073_s8 }
 0x4b0   : > { %s1059_s6 = scalar_lea.sflag [#allocation6], %s2083_s7  ;;  %s1771_s11 = scalar_lea.vmem %s2355_s8, 512 }
 0x4b1   : > { %p1772_p8 = scmp.ne.s32.totalorder %s2355_s8, %s1771_s11  ;;  %s1896_s13 = smov [#allocation9]  }
 0x4b2   : > { %s1775_s12 = sshll.u32 %s1896_s13, 4  ;;  %s1776_s12 = int_to_ptr.vmem [resolvable:$false] %s1775_s12 }
 0x4b3   : > { %p1773_p11 = pnand %p1772_p8, %p2024_p10  ;;  %s1777_s25 = scalar_lea.vmem %s1776_s12, 1024 }
 0x4b4   : > { %p1778_p5 = scmp.lt.s32.totalorder %s2355_s8, %s1776_s12  ;;  %p1779_p9 = scmp.lt.s32.totalorder %s1777_s25, %s1771_s11 }
 0x4b5   : > { %p1774_p0 = pneg %p1773_p11 }
 0x4b6   : > { %p1780_p1 = por %p1779_p9, %p1778_p5 }
 0x4b8   : > { %p1781_p2 = pnand %p1780_p1, %p1774_p0 }
 0x4ba   : > { %1784 = shalt.err (!%p1781_p2)
}
 0x4bb   : > { %s1785_s14 = scalar_lea.hbm %s2352_s22, 512  ;;  %s1789_s28 = scalar_lea.hbm %s2428_s2, 1024 }
 0x4bc   : > { %p1786_p3 = scmp.ne.s32.totalorder %s2352_s22, %s1785_s14  ;;  %p1790_p4 = scmp.lt.u32.totalorder %s2352_s22, %s2428_s2 }
 0x4bd   : > { %p1791_p6 = scmp.lt.u32.totalorder %s1789_s28, %s1785_s14  ;;  %p1793_p11 = scmp.lt.u32.totalorder %s1785_s14, %s2352_s22 }
 0x4be   : > { %p1787_p7 = pnand %p1786_p3, %p2024_p10 }
 0x4bf   : > { %p1792_p8 = por %p1791_p6, %p1790_p4 }
 0x4c0   : > { %p1788_p13 = pneg %p1787_p7 }
 0x4c1   : > { %p1794_p0 = por %p1793_p11, %p1792_p8 }
 0x4c3   : > { %p1795_p5 = pnand %p1794_p0, %p1788_p13 }
 0x4c5   : > { %1798 = shalt.err (!%p1795_p5)
}
 0x4c6   : > { %s1897_s27 = smov 128   ;;  %s1898_s23 = smov 8  }
 0x4c7   : > { %1536 = dma.vmem_to_hbm [thread:$0]  (%p2024_p10), %s2355_s8, 512, %s2352_s22, %s1059_s6, %s1897_s27, %s1897_s27, %s1898_s23  }
 0x4c8   : > { %s1899_s11 = smov [#allocation12]  }
 0x4c9   : > { %s1102_s13 = sshll.u32 %s1899_s11, 4  ;;  %s1103_s13 = int_to_ptr.vmem [resolvable:$true] %s1102_s13 }
 0x4ca   : > { %s1799_s12 = scalar_lea.vmem %s1103_s13, 128  ;;  %p1806_p3 = scmp.lt.s32.totalorder %s1103_s13, %s1103_s13 }
 0x4cb   : > { %p1800_p9 = scmp.ne.s32.totalorder %s1103_s13, %s1799_s12  ;;  %p1807_p7 = scmp.lt.s32.totalorder %s1799_s12, %s1799_s12 }
 0x4cd   : > { %p1801_p1 = pnand %p1800_p9, %p2451_p12  ;;  %p1808_p13 = por %p1807_p7, %p1806_p3 }
 0x4cf   : > { %p1802_p2 = pneg %p1801_p1 }
 0x4d1   : > { %p1809_p4 = pnand %p1808_p13, %p1802_p2 }
 0x4d3   : > { %1812 = shalt.err (!%p1809_p4)
}
 0x4d4   : > { %s1813_s30 = scalar_lea.hbm %s2430_s4, 128 }
 0x4d5   : > { %p1814_p10 = scmp.ne.s32.totalorder %s2430_s4, %s1813_s30  ;;  %p1819_p11 = scmp.lt.u32.totalorder %s1813_s30, %s2430_s4 }
 0x4d7   : > { %p1815_p6 = pnand %p1814_p10, %p2451_p12 }
 0x4d9   : > { %p1816_p8 = pneg %p1815_p6 }
 0x4db   : > { %p1821_p0 = pnand %p1819_p11, %p1816_p8 }
 0x4dd   : > { %1824 = shalt.err (!%p1821_p0)
}
 0x4de   : > { %1540 = dma.vmem_to_hbm [thread:$0]  (%p2451_p12), %s1103_s13, 128, %s2430_s4, [#allocation11]  }
 0x4df   : > { %1858 = dma.done.wait (%p2451_p12), [#allocation11], 256  }
 0x4e0   : > { %1860 = vsyncadd (%p2451_p12), [#allocation11], 4294967040 }
 0x4e1 PF: > { %s1122_s28 = sand.u32 1, %s1867_s15   ;;  %p2452_p5 = scmp.ne.s32.totalorder %s2440_s26, 0 }
 0x4e2   : > { %p2453_p9 = scmp.ge.s32.totalorder %s1887_s20, 2  ;;  %s1123_s29 = scalar_lea.sflag [#allocation6], %s1122_s28 }
 0x4e4   : > { %p1555_p1 = pnand %p2453_p9, %p2452_p5 }
 0x4e6   : > { %1862 = dma.done.wait (!%p1555_p1), %s1123_s29, 512  }
 0x4e7   : > { %1864 = vsyncadd (!%p1555_p1), %s1123_s29, 4294966784  ;;  %s23_s20 = sadd.s32 1, %s1887_s20   ;;  %s2454_s15 = smov %s1871_s16 }
 0x4e8   : > { %p20_p2 = scmp.ge.s32.totalorder %s23_s20, 4   ;;  %s2455_s16 = smov %s1875_s17 }
 0x4e9   : > { %s2456_s17 = smov %s2033_s10  ;;  %s2457_s18 = smov %s1883_s19 }
 0x4ea   : > { %s2458_s19 = smov %s2460_s5  ;;  %22 = sbr.rel (!%p20_p2) target bundleno = 8 (0x8), region = 109 }
 0x4f1   :  { %1128 = vsyncpa [#allocation5], 1 }
 0x4f2   :  { %1130 = vsyncpa [#allocation5 + $0x1], 1 }
 0x4f3   :  { %1131 = vsyncpa [#allocation8], 1 }
 0x4f4   :  { %1132 = vsyncpa [#allocation6], 1 }
 0x4f5   :  { %1134 = vsyncpa [#allocation6 + $0x1], 1 }
 0x4f6   :  { %1135 = vsyncpa [#allocation11], 1 }

</bundles_post_ra>
